<compile_context>
chip_gen: v6e
topology: v6e:2x2x1
jax: 0.10.0
libtpu: 0.0.40
codegen_flags: <defaults>
</compile_context>

<pallas_src>
import numpy as np
import jax
import jax.numpy as jnp
from jax.experimental import pallas as pl
from jax.experimental.pallas import tpu as pltpu

H = 10
W = 10
HW = H * W            # 100: contraction dim and per-row output features
KP = 128              # lane-tile width; real half of fused weight in lanes [0,128),
                      # imag half in lanes [128,256) -> tile-aligned split in-kernel
MAX_TM = 2048         # row-tile cap (~3.2 MiB double-buffered VMEM traffic)
TARGET_STEPS = 8      # aim for >= 8 grid steps (pipelining + v7x megacore split)


def _round_up(n, m):
    return -(-n // m) * m


def _idft2d_amp_kernel(x_ref, w_ref, o_ref):
    """x_ref: (TM, 100)   w_ref: (100, 256)   o_ref: (TM, 100).

    One fused MXU pass:  y = x @ [Wr | Wi]  ->  (TM, 256)
      real = y[:, :128]   (valid data in lanes [0,100))
      imag = y[:, 128:]   (valid data in lanes [0,100))
    out = sqrt(real^2 + imag^2), stored as a 100-lane (masked) block.
    """
    y = jnp.dot(x_ref[...], w_ref[...], preferred_element_type=jnp.float32)
    real = y[:, :KP]                                   # tile-aligned slice
    imag = y[:, KP:]                                   # tile-aligned slice
    amp = jnp.sqrt(real * real + imag * imag)          # (TM, 128), EUP sqrt
    o_ref[...] = amp[:, :HW]                           # (TM, 100) masked store


def make_idft2d_amp_weights(h, w, dtype=jnp.float32):
    """Fixed 'parameters' of iDft2d(h, w): inverse-DFT bases, fused real|imag.

    Returns W_comb of shape (h*w, 256) such that for x_flat of shape (N, h*w):
        y = x_flat @ W_comb
        y[:, :h*w]          == Re(ifft2(x)) flattened
        y[:, 128:128+h*w]   == Im(ifft2(x)) flattened
    with the 1/(h*w) normalization.  Unused lanes [h*w,128) and [128+h*w,256)
    are zero.
    """
    m = jnp.arange(h, dtype=jnp.float32)
    ang_h = 2.0 * jnp.pi * jnp.outer(m, m) / h
    Ch = jnp.cos(ang_h) / h
    Sh = jnp.sin(ang_h) / h

    n = jnp.arange(w, dtype=jnp.float32)
    ang_w = 2.0 * jnp.pi * jnp.outer(n, n) / w
    Cw = jnp.cos(ang_w) / w
    Sw = jnp.sin(ang_w) / w

    # kron(A, B)[(m*W+n), (u*W+v)] = A[m,u] * B[n,v]
    Wr = jnp.kron(Ch, Cw) - jnp.kron(Sh, Sw)   # rows = output (m,n), cols = input (u,v)
    Wi = jnp.kron(Ch, Sw) + jnp.kron(Sh, Cw)

    hw = h * w
    W_comb = jnp.zeros((hw, 2 * KP), dtype=dtype)
    W_comb = W_comb.at[:, :hw].set(Wr.T.astype(dtype))          # real -> lanes [0, hw)
    W_comb = W_comb.at[:, KP:KP + hw].set(Wi.T.astype(dtype))   # imag -> lanes [128, 128+hw)
    return W_comb


def _choose_tm(n_rows):
    """Sublane-aligned row tile: >= ~TARGET_STEPS grid steps, capped at MAX_TM."""
    tm = _round_up(max(1, -(-n_rows // TARGET_STEPS)), 8)
    return max(8, min(MAX_TM, tm))


def mocknn_forward(x, w_comb):
    """MockNN.forward.  x: (B, C, 10, 10) float32 -> (B, C, 10, 10) float32."""
    B, C, h, w = x.shape
    assert (h, w) == (H, W)
    hw = h * w
    n_rows = B * C

    # Contiguous, copy-free reshape; no pre-padding of rows or of the K dim.
    x_flat = x.reshape(n_rows, hw)
    if x_flat.dtype != jnp.float32:
        x_flat = x_flat.astype(jnp.float32)

    tm = _choose_tm(n_rows)
    grid = (pl.cdiv(n_rows, tm),)

    cost = pl.CostEstimate(
        flops=2 * n_rows * hw * (2 * KP) + 3 * n_rows * KP,
        transcendentals=n_rows * hw,                       # one sqrt per output elem
        bytes_accessed=(2 * n_rows * hw + hw * 2 * KP) * 4,
    )

    out_flat = pl.pallas_call(
        _idft2d_amp_kernel,
        out_shape=jax.ShapeDtypeStruct((n_rows, hw), jnp.float32),
        grid=grid,
        in_specs=[
            # Row-tiled input; last dim = full array dim (100), so no lane pad copy.
            pl.BlockSpec((tm, hw), lambda i: (i, 0)),
            # Fused real|imag weights, constant index_map -> VMEM-resident (100 KiB).
            pl.BlockSpec((hw, 2 * KP), lambda i: (0, 0)),
        ],
        # Full-last-dim output block; ragged last row-block writeback is masked.
        out_specs=pl.BlockSpec((tm, hw), lambda i: (i, 0)),
        compiler_params=pltpu.CompilerParams(
            dimension_semantics=("parallel",),
        ),
        cost_estimate=cost,
    )(x_flat, w_comb)

    # Contiguous (free) reshape back to NCHW; no slicing / extra HBM pass.
    return out_flat.reshape(B, C, h, w)


if __name__ == "__main__":
    key = jax.random.PRNGKey(0)
    # Small shapes consistent with iDft2d(10, 10): batch=2, channels=4, 10x10.
    x = jax.random.normal(key, (2, 4, H, W), dtype=jnp.float32)

    w_comb = make_idft2d_amp_weights(H, W)

    out = mocknn_forward(x, w_comb)
    out = jax.block_until_ready(out)

    # Reference: amplitude of 2D inverse DFT.
    ref = jnp.abs(jnp.fft.ifft2(x.astype(jnp.complex64), axes=(-2, -1)))

    assert out.shape == (2, 4, H, W)
    np.testing.assert_allclose(np.asarray(out), np.asarray(ref), rtol=1e-4, atol=1e-5)
    print("KERNEL_OK")
</pallas_src>

<mosaic_0001>
module attributes {stable_mosaic.version = 11 : i64} {
  func.func @_idft2d_amp_kernel(%arg0: i32, %arg1: memref<8x100xf32, #tpu.memory_space<vmem>>, %arg2: memref<100x256xf32, #tpu.memory_space<vmem>>, %arg3: memref<8x100xf32, #tpu.memory_space<vmem>>) attributes {dimension_semantics = [#tpu.dimension_semantics<parallel>], iteration_bounds = array<i64: 1>, scalar_prefetch = 0 : i64, scratch_operands = 0 : i64, tpu.core_type = #tpu.core_type<tc>, window_params = [{transform_indices = @transform_0, window_bounds = array<i64: 8, 100>}, {pipeline_mode = #tpu.pipeline_mode<synchronous>, transform_indices = @transform_1, window_bounds = array<i64: 100, 256>}, {transform_indices = @transform_2, window_bounds = array<i64: 8, 100>}]} {
    %c0 = arith.constant 0 : index
    %c0_0 = arith.constant 0 : index
    %0 = vector.load %arg1[%c0, %c0_0] : memref<8x100xf32, #tpu.memory_space<vmem>>, vector<8x100xf32>
    %c0_1 = arith.constant 0 : index
    %c0_2 = arith.constant 0 : index
    %1 = vector.load %arg2[%c0_1, %c0_2] : memref<100x256xf32, #tpu.memory_space<vmem>>, vector<100x256xf32>
    %cst = arith.constant dense<0.000000e+00> : vector<8x256xf32>
    %2 = tpu.matmul %0, %1, %cst {dimension_numbers = #tpu.dot_dimension_numbers<[1], [0], [0], [1], [0, 0, 1, 1], [], []>} : vector<8x100xf32>, vector<100x256xf32>, vector<8x256xf32> -> vector<8x256xf32>
    %3 = vector.extract_strided_slice %2 {offsets = [0, 0], sizes = [8, 128], strides = [1, 1]} : vector<8x256xf32> to vector<8x128xf32>
    %4 = vector.extract_strided_slice %2 {offsets = [0, 128], sizes = [8, 128], strides = [1, 1]} : vector<8x256xf32> to vector<8x128xf32>
    %5 = arith.mulf %3, %3 : vector<8x128xf32>
    %6 = arith.mulf %4, %4 : vector<8x128xf32>
    %7 = arith.addf %5, %6 : vector<8x128xf32>
    %8 = math.sqrt %7 : vector<8x128xf32>
    %9 = vector.extract_strided_slice %8 {offsets = [0, 0], sizes = [8, 100], strides = [1, 1]} : vector<8x128xf32> to vector<8x100xf32>
    %c0_3 = arith.constant 0 : index
    %c0_4 = arith.constant 0 : index
    %10 = vector.load %arg3[%c0_3, %c0_4] : memref<8x100xf32, #tpu.memory_space<vmem>>, vector<8x100xf32>
    tpu.vector_store %arg3[%c0_3, %c0_4], %9 {strides = array<i32>} : memref<8x100xf32, #tpu.memory_space<vmem>>, vector<8x100xf32>,
    return
  }
  func.func @transform_0(%arg0: i32) -> (i32, i32) {
    %c0_i32 = arith.constant 0 : i32
    %c0_i32_0 = arith.constant 0 : i32
    return %arg0, %c0_i32 : i32, i32
  }
  func.func @transform_1(%arg0: i32) -> (i32, i32) {
    %c0_i32 = arith.constant 0 : i32
    %c0_i32_0 = arith.constant 0 : i32
    %c0_i32_1 = arith.constant 0 : i32
    return %c0_i32, %c0_i32_0 : i32, i32
  }
  func.func @transform_2(%arg0: i32) -> (i32, i32) {
    %c0_i32 = arith.constant 0 : i32
    %c0_i32_0 = arith.constant 0 : i32
    return %arg0, %c0_i32 : i32, i32
  }
}

</mosaic_0001>

<bundles_post_ra>
// kernel: tpu_custom_call.1
= control target key start
LH: loop header
LB: loop body
LE: loop exit
PB: predicated region body
PF: predicated region fallthrough
CT: control target
= control target key end

     0   :  { %7 = vsyncpa [#allocation3], 0  ;;  %s283_s0 = inlined_call_operand.hbm [shape: f32[8,100], index: 0, kind: input, shape index: {}]   ;;  %s284_s1 = inlined_call_operand.hbm [shape: f32[100,256], index: 1, kind: input, shape index: {}]   ;;  %s285_s2 = inlined_call_operand.hbm [shape: f32[8,100], index: 2, kind: output, shape index: {}]  }
   0x1   :  { %8 = vsyncpa [#allocation6], 0 }
   0x2   :  { %9 = vsyncpa [#allocation4], 0  ;;  %s251_s9 = smov [#allocation2]   ;;  %s252_s11 = smov [#allocation5]  }
   0x3   :  { %s16_s10 = sshll.u32 %s251_s9, 4  ;;  %s25_s12 = sshll.u32 %s252_s11, 4  ;;  %s17_s10 = int_to_ptr.vmem [resolvable:$true] %s16_s10  ;;  %s26_s12 = int_to_ptr.vmem [resolvable:$true] %s25_s12 }
   0x4   :  { %s193_s13 = scalar_lea.vmem %s17_s10, 128  ;;  %p198_p1 = scmp.lt.s32.totalorder %s17_s10, %s17_s10 }
   0x5   :  { %p194_p0 = scmp.ne.s32.totalorder %s17_s10, %s193_s13  ;;  %p199_p2 = scmp.lt.s32.totalorder %s193_s13, %s193_s13 }
   0x7   :  { %p200_p3 = por %p199_p2, %p198_p1 }
   0x9   :  { %p201_p4 = pnand %p200_p3, %p194_p0 }
   0xb   :  { %204 = shalt.err (!%p201_p4)
}
   0xc   :  { %19 = dma.hbm_to_vmem [thread:$0]  %s283_s0, 128, %s17_s10, [#allocation3]  }
   0xd   :  { %s213_s16 = scalar_lea.vmem %s26_s12, 3328  ;;  %p218_p6 = scmp.lt.s32.totalorder %s26_s12, %s26_s12 }
   0xe   :  { %p214_p5 = scmp.ne.s32.totalorder %s26_s12, %s213_s16  ;;  %p219_p7 = scmp.lt.s32.totalorder %s213_s16, %s213_s16 }
  0x10   :  { %p220_p8 = por %p219_p7, %p218_p6 }
  0x12   :  { %p221_p9 = pnand %p220_p8, %p214_p5 }
  0x14   :  { %224 = shalt.err (!%p221_p9)
}
  0x15   :  { %s253_s17 = smov 256   ;;  %s254_s18 = smov 16  }
  0x16   :  { %31 = dma.hbm_to_vmem [thread:$0]  %s284_s1, 3328, %s26_s12, [#allocation6], %s253_s17, %s253_s17, %s254_s18  }
  0x17   :  { %245 = dma.done.wait [#allocation3], 128  }
  0x18   :  { %246 = vsyncadd [#allocation3], 4294967168 }
  0x19   :  { %247 = dma.done.wait [#allocation6], 3328  }
  0x1a   :  { %248 = vsyncadd [#allocation6], 4294963968  ;;  %v255_v0 = vmov 0.0   ;;  %vm69_vm0 = vcmask 1043456   ;;  %v64_v1 = vld [vmem:[#allocation5 + $0xc8] sm:$0xf] }
  0x1b   :  { %140 = vmatprep.mubr.f32.mxu0 %v255_v0  ;;  %v63_v2 = vld [vmem:[#allocation5 + $0xc0] sm:$0xf]  ;;  %v62_v3 = vld [vmem:[#allocation5 + $0xb8] sm:$0xff]  ;;  %174 = vmatprep.subr.msk.mxu0 %vm69_vm0, %v64_v1  ;;  %v61_v4 = vld [vmem:[#allocation5 + $0xb0] sm:$0xff]  ;;  %vm65_vm1 = vcmask 818176   ;;  %s256_s0 = smov [#allocation7]  }
  0x1c   :  { %175 = vmatpush1.msk.msra.mxu0 %vm69_vm0, %v63_v2  ;;  %v60_v5 = vld [vmem:[#allocation5 + $0xa8] sm:$0xff]  ;;  %v59_v6 = vld [vmem:[#allocation5 + $0xa0] sm:$0xff]  ;;  %v58_v7 = vld [vmem:[#allocation5 + $0x98] sm:$0xff]  ;;  %s164_s1 = sshll.u32 %s256_s0, 4  ;;  %s165_s1 = int_to_ptr.vmem [resolvable:$true] %s164_s1 }
  0x1d   :  { %84 = vmatprep.subr.mxu0 %v62_v3  ;;  %v57_v8 = vld [vmem:[#allocation5 + $0x90] sm:$0xff]  ;;  %v56_v9 = vld [vmem:[#allocation5 + $0x88] sm:$0xff]  ;;  %v55_v10 = vld [vmem:[#allocation5 + $0x80] sm:$0xff]  ;;  %s225_s21 = scalar_lea.vmem %s165_s1, 128  ;;  %p230_p11 = scmp.lt.s32.totalorder %s165_s1, %s165_s1 }
  0x1e   :  { %85 = vmatpush1.msra.mxu0 %v61_v4  ;;  %v54_v11 = vld [vmem:[#allocation5 + $0x78] sm:$0xff]  ;;  %v53_v12 = vld [vmem:[#allocation5 + $0x70] sm:$0xff]  ;;  %v52_v13 = vld [vmem:[#allocation5 + $0x68] sm:$0xff]  ;;  %p226_p10 = scmp.ne.s32.totalorder %s165_s1, %s225_s21  ;;  %p231_p12 = scmp.lt.s32.totalorder %s225_s21, %s225_s21 }
  0x1f   :  { %86 = vmatprep.subr.mxu0 %v60_v5  ;;  %v51_v14 = vld [vmem:[#allocation5 + $0x60] sm:$0xff]  ;;  %v50_v15 = vld [vmem:[#allocation5 + $0x58] sm:$0xff]  ;;  %v49_v16 = vld [vmem:[#allocation5 + $0x50] sm:$0xff] }
  0x20   :  { %87 = vmatpush1.msra.mxu0 %v59_v6  ;;  %v48_v17 = vld [vmem:[#allocation5 + $0x48] sm:$0xff]  ;;  %v47_v18 = vld [vmem:[#allocation5 + $0x40] sm:$0xff]  ;;  %v46_v19 = vld [vmem:[#allocation5 + $0x38] sm:$0xff]  ;;  %p232_p13 = por %p231_p12, %p230_p11 }
  0x21   :  { %88 = vmatprep.subr.mxu0 %v58_v7  ;;  %v45_v20 = vld [vmem:[#allocation5 + $0x30] sm:$0xff]  ;;  %v44_v21 = vld [vmem:[#allocation5 + $0x28] sm:$0xff]  ;;  %v43_v22 = vld [vmem:[#allocation5 + $0x20] sm:$0xff] }
  0x22   :  { %89 = vmatpush1.msra.mxu0 %v57_v8  ;;  %v42_v23 = vld [vmem:[#allocation5 + $0x18] sm:$0xff]  ;;  %v41_v24 = vld [vmem:[#allocation5 + $0x10] sm:$0xff]  ;;  %v40_v25 = vld [vmem:[#allocation5 + $0x8] sm:$0xff]  ;;  %p233_p0 = pnand %p232_p13, %p226_p10 }
  0x23   :  { %90 = vmatprep.subr.mxu0 %v56_v9  ;;  %v39_v26 = vld [vmem:[#allocation5] sm:$0xff]  ;;  %v38_v27 = vld [vmem:[#allocation2] sm:$0xff] }
  0x24   :  { %91 = vmatpush1.msra.mxu0 %v55_v10 }
  0x25   :  { %92 = vmatprep.subr.mxu0 %v54_v11 }
  0x26   :  { %93 = vmatpush1.msra.mxu0 %v53_v12 }
  0x27   :  { %94 = vmatprep.subr.mxu0 %v52_v13 }
  0x28   :  { %95 = vmatpush1.msra.mxu0 %v51_v14 }
  0x29   :  { %96 = vmatprep.subr.mxu0 %v50_v15 }
  0x2a   :  { %97 = vmatpush1.msra.mxu0 %v49_v16 }
  0x2b   :  { %98 = vmatprep.subr.mxu0 %v48_v17 }
  0x2c   :  { %99 = vmatpush1.msra.mxu0 %v47_v18 }
  0x2d   :  { %100 = vmatprep.subr.mxu0 %v46_v19 }
  0x2e   :  { %101 = vmatpush1.msra.mxu0 %v45_v20 }
  0x2f   :  { %102 = vmatprep.subr.mxu0 %v44_v21 }
  0x30   :  { %103 = vmatpush1.msra.mxu0 %v43_v22 }
  0x31   :  { %104 = vmatprep.subr.mxu0 %v42_v23 }
  0x32   :  { %105 = vmatpush1.msra.mxu0 %v41_v24 }
  0x33   :  { %106 = vmatprep.subr.mxu0 %v40_v25 }
  0x34   :  { %107 = vmatpush1.msra.mxu0 %v39_v26 }
  0x35   :  { %176 = vmatmul.mubr.msk.f32.vlgmr.msra.gmra.mxu0 %vm65_vm1, %v38_v27 }
  0xf5   :  { %v142_v28 = vpop.f32.mrf.mxu0 }
  0xf6   :  { %v147_v30 = vmul.f32 %v142_v28, %v142_v28 }
  0xf7   :  { %v144_v29 = vpop.f32.mrf.mxu0 }
  0xf8   :  { %v148_v31 = vmul.f32 %v144_v29, %v144_v29 }
  0xfa   :  { %v149_v32 = vadd.f32 %v148_v31, %v147_v30 }
  0xfc   :  { %183 = vrsqrt.f32 %v149_v32  ;;  %vm152_vm2 = vcmp.eq.f32.partialorder %v149_v32, inf  ;;  %v155_v35 = vand.u32 2147483648, %v149_v32  ;;  %vm154_vm3 = vcmp.eq.f32.partialorder %v149_v32, 0.0 }
 0x109   :  { %v184_v33 = vpop.eup %183 }
 0x10a   :  { %v151_v34 = vmul.f32 %v184_v33, %v149_v32 }
 0x10c   :  { %v153_v36 = vsel %vm152_vm2, %v149_v32, %v151_v34 }
 0x10d   :  { %v156_v37 = vsel %vm154_vm3, %v155_v35, %v153_v36 }
 0x10e   :  { %157 = vst.msk [vmem:[#allocation7] sm:$0xff] %vm65_vm1, %v156_v37 }
 0x10f   :  { %236 = shalt.err (!%p233_p0)
}
 0x110   :  { %167 = dma.vmem_to_hbm [thread:$0]  %s165_s1, 128, %s285_s2, [#allocation4]  }
 0x111   :  { %249 = dma.done.wait [#allocation4], 128  }
 0x112   :  { %250 = vsyncadd [#allocation4], 4294967168 }
 0x113   :  { %171 = vsyncpa [#allocation3], 1 }
 0x114   :  { %172 = vsyncpa [#allocation6], 1 }
 0x115   :  { %173 = vsyncpa [#allocation4], 1 }

</bundles_post_ra>
